<compile_context>
chip_gen: v7x
topology: tpu7x:2x2x1
jax: 0.10.0
libtpu: 0.0.40
codegen_flags: <defaults>
</compile_context>

<pallas_src>
import jax
import jax.numpy as jnp
import numpy as np
from jax.experimental import pallas as pl
from jax.experimental.pallas import tpu as pltpu

EPS = 1e-5  # PyTorch BatchNorm1d default eps


def seq_gc_kernel(atom_ref, gb_ref, wan_ref, wb_ref, b_ref, out_ref):
    """All conv_depth GraphConv layers; whole problem resident in VMEM.

    atom_ref : (N, D)      f32   atom features
    gb_ref   : (N*M, N+B)  bf16  [neighbor one-hot | bond feats], row = j*N + i
    wan_ref  : (L, D, 4D)  bf16  [self-weights | neighbor-weights] columns
    wb_ref   : (L, B, 2D)  f32   bond-feature weights
    b_ref    : (L, 1, 2D)  f32   bias
    out_ref  : (N, D)      f32
    """
    atom = atom_ref[...]                      # (N, D)     f32
    gb = gb_ref[...]                          # (N*M, N+B) bf16
    n_layers = wan_ref.shape[0]
    N, D = atom.shape
    NM = gb.shape[0]
    M = NM // N
    D2 = 2 * D

    def mm(a, b):                             # MXU matmul, f32 accumulation
        return jnp.dot(a, b, preferred_element_type=jnp.float32)

    def bn(x):                                # one-pass train-mode BN over rows:
        inv_n = 1.0 / x.shape[0]              # batch stats, biased var, no affine
        mu = jnp.sum(x, axis=0, keepdims=True) * inv_n
        ex2 = jnp.sum(x * x, axis=0, keepdims=True) * inv_n
        var = ex2 - mu * mu
        return (x - mu) * jax.lax.rsqrt(var + EPS)

    def sigmoid(x):                           # divide -> EUP approx reciprocal
        return pl.reciprocal(1.0 + jnp.exp(-x), approx=True)

    def softplus(x):                          # numerically stable softplus
        return jnp.maximum(x, 0.0) + jnp.log(1.0 + jnp.exp(-jnp.abs(x)))

    # Static layer loop (L is small); use lax.fori_loop if conv_depth grows.
    for l in range(n_layers):
        a16 = atom.astype(jnp.bfloat16)
        # One fused atom-side matmul: columns [:2D] = self, [2D:] = neighbor.
        r = mm(a16, wan_ref[l])               # (N, 4D) f32, 128 lanes at D=32
        sa = r[:, :D2]                        # (N, 2D) f32 self features (VPU only)
        sn = r[:, D2:]                        # (N, 2D) f32 neighbor features (feeds MXU)
        # One fused per-bond matmul: gb @ [sn ; wb] == gather(sn) + bond @ wb.
        # The concat is f32 and sn is exactly one (8,128) sublane tile -> aligned.
        snwb = jnp.concatenate([sn, wb_ref[l]], axis=0).astype(jnp.bfloat16)  # (N+B, 2D)
        nb = mm(gb, snwb)                     # (NM, 2D) f32
        # Self-atom term: rows are ordered (j, i), so each of the M contiguous
        # N-row blocks sees `sa` verbatim -> tile-aligned sublane repeat, no MXU.
        self_term = jnp.concatenate([sa] * M, axis=0)        # (NM, 2D) f32
        pre = bn(nb + self_term + b_ref[l])                  # BNorm1 over N*M rows
        # chunk -> gate (all f32)
        prod = sigmoid(pre[:, :D]) * softplus(pre[:, D:])    # (NM, D)
        # Segment sum over the M neighbor slots of each atom: with (j, i) row
        # ordering this is a sum of M contiguous (N, D) blocks (static slices).
        summed = prod[:N]
        for j in range(1, M):
            summed = summed + prod[j * N:(j + 1) * N]        # (N, D) f32, exact
        atom = softplus(atom + bn(summed))    # BNorm2 + residual + SPlus2

    # (N, D)=(8,32) store is not lane-dense; fine at toy size (see scale-up note).
    out_ref[...] = atom


def seq_gc_pallas(atom, bond, bond_idx, params):
    N, D = atom.shape
    M = bond_idx.shape[1]
    B = bond.shape[2]
    NM = N * M

    # Per-bond row order (j, i): row j*N + i <-> bond (atom i, neighbor slot j).
    # This makes the in-kernel self-term a tile-aligned repeat and the segment
    # sum a sum of contiguous blocks, so no reshapes / one-hot repeat or pool
    # matrices are needed inside the kernel.
    cols = jnp.arange(N, dtype=jnp.int32)[None, :]
    gat = (bond_idx.T.reshape(NM, 1) == cols).astype(jnp.float32)       # (NM, N)
    bond_t = bond.transpose(1, 0, 2).reshape(NM, B)                     # (NM, B)
    gb = jnp.concatenate([gat, bond_t], axis=1).astype(jnp.bfloat16)    # (NM, N+B)
    # TODO(synk): at scale, build `gat` per tile in-kernel from scalar-prefetched
    # bond_idx (PrefetchScalarGridSpec) instead of shipping O(N^2*M) bytes.

    wan, wb, b = params  # stacked (L, ...) weight tensors
    args = (atom, gb, wan, wb, b)
    vmem = pl.BlockSpec(memory_space=pltpu.MemorySpace.VMEM)
    return pl.pallas_call(
        seq_gc_kernel,
        out_shape=jax.ShapeDtypeStruct((N, D), jnp.float32),
        in_specs=[vmem] * len(args),
        out_specs=vmem,
    )(*args)


def init_params(key, atom_dim, bond_dim, conv_depth):
    """Deterministic init mimicking nn.Linear(2D+B -> 2D) default uniform init."""
    D, B = atom_dim, bond_dim
    fan_in = 2 * D + B
    bound = 1.0 / np.sqrt(fan_in)
    wans, wbs, bs, layers_raw = [], [], [], []
    for _ in range(conv_depth):
        key, k1, k2 = jax.random.split(key, 3)
        W = jax.random.uniform(k1, (2 * D, fan_in), jnp.float32, -bound, bound)
        b = jax.random.uniform(k2, (2 * D,), jnp.float32, -bound, bound)
        Wnp, bnp = np.asarray(W), np.asarray(b)
        Wt = Wnp.T  # (2D+B, 2D); rows: [self-atom | neighbor-atom | bond]
        wa, wn, wb_ = Wt[:D], Wt[D:2 * D], Wt[2 * D:]
        wans.append(np.concatenate([wa, wn], axis=1))   # (D, 4D): [self | neighbor] cols
        wbs.append(wb_)                                  # (B, 2D)
        bs.append(bnp.reshape(1, 2 * D))
        layers_raw.append((Wnp, bnp))
    params = (
        jnp.asarray(np.stack(wans), dtype=jnp.bfloat16),  # (L, D, 4D)
        jnp.asarray(np.stack(wbs), dtype=jnp.float32),    # (L, B, 2D) f32: aligned concat
        jnp.asarray(np.stack(bs), dtype=jnp.float32),     # (L, 1, 2D)
    )
    return params, layers_raw


def seq_gc_ref(atom, bond, bond_idx, layers_raw):
    """Pure numpy reference matching the PyTorch forward (train-mode BN)."""
    atom = np.asarray(atom, np.float32)
    bond = np.asarray(bond, np.float32)
    bond_idx = np.asarray(bond_idx)
    N, M = bond_idx.shape
    D = atom.shape[1]

    def softplus(x):
        return np.logaddexp(x, 0.0)

    def sigmoid(x):
        return 1.0 / (1.0 + np.exp(-x))

    for W, b in layers_raw:
        atom_nb = atom[bond_idx]                                     # (N, M, D)
        atom_exp = np.broadcast_to(atom[:, None, :], (N, M, D))
        total = np.concatenate([atom_exp, atom_nb, bond], axis=2)    # (N, M, 2D+B)
        g = total @ W.T + b                                          # (N, M, 2D)
        mu, var = g.mean(axis=(0, 1)), g.var(axis=(0, 1))
        g = (g - mu) / np.sqrt(var + EPS)                            # BNorm1
        f, c = g[..., :D], g[..., D:]
        s = (sigmoid(f) * softplus(c)).sum(axis=1)                   # (N, D)
        mu2, var2 = s.mean(axis=0), s.var(axis=0)
        s = (s - mu2) / np.sqrt(var2 + EPS)                          # BNorm2
        atom = softplus(atom + s)
    return atom


if __name__ == "__main__":
    N, M, atom_dim, bond_dim, conv_depth = 8, 4, 32, 16, 2

    key = jax.random.PRNGKey(0)
    key, ka, kb, ki, kp = jax.random.split(key, 5)
    atom = jax.random.normal(ka, (N, atom_dim), jnp.float32)
    bond = jax.random.normal(kb, (N, M, bond_dim), jnp.float32)
    bond_idx = jax.random.randint(ki, (N, M), 0, N, dtype=jnp.int32)

    params, layers_raw = init_params(kp, atom_dim, bond_dim, conv_depth)

    out = seq_gc_pallas(atom, bond, bond_idx, params)
    out = jax.block_until_ready(out)

    ref = seq_gc_ref(np.asarray(atom), np.asarray(bond), np.asarray(bond_idx), layers_raw)
    assert out.shape == (N, atom_dim)
    # Tolerance accounts for bf16 MXU operands (f32 accumulation / BN / gating
    # stay f32) and the approx-reciprocal sigmoid (~1e-3 rel).
    assert np.allclose(np.asarray(out), ref, atol=3e-2, rtol=3e-2), \
        float(np.max(np.abs(np.asarray(out) - ref)))
    print("KERNEL_OK")
</pallas_src>

<mosaic_0001>
module attributes {stable_mosaic.version = 11 : i64} {
  func.func @seq_gc_kernel(%arg0: memref<8x32xf32, #tpu.memory_space<vmem>>, %arg1: memref<32x24xbf16, #tpu.memory_space<vmem>>, %arg2: memref<2x32x128xbf16, #tpu.memory_space<vmem>>, %arg3: memref<2x16x64xf32, #tpu.memory_space<vmem>>, %arg4: memref<2x1x64xf32, #tpu.memory_space<vmem>>, %arg5: memref<8x32xf32, #tpu.memory_space<vmem>>) attributes {dimension_semantics = [], scalar_prefetch = 0 : i64, scratch_operands = 0 : i64, tpu.core_type = #tpu.core_type<tc>} {
    %c0 = arith.constant 0 : index
    %c0_0 = arith.constant 0 : index
    %0 = vector.load %arg0[%c0, %c0_0] : memref<8x32xf32, #tpu.memory_space<vmem>>, vector<8x32xf32>
    %c0_1 = arith.constant 0 : index
    %c0_2 = arith.constant 0 : index
    %1 = vector.load %arg1[%c0_1, %c0_2] : memref<32x24xbf16, #tpu.memory_space<vmem>>, vector<32x24xbf16>
    %2 = arith.truncf %0 : vector<8x32xf32> to vector<8x32xbf16>
    %c0_3 = arith.constant 0 : index
    %c0_4 = arith.constant 0 : index
    %c0_5 = arith.constant 0 : index
    %3 = vector.load %arg2[%c0_3, %c0_4, %c0_5] : memref<2x32x128xbf16, #tpu.memory_space<vmem>>, vector<1x32x128xbf16>
    %4 = vector.shape_cast %3 : vector<1x32x128xbf16> to vector<32x128xbf16>
    %cst = arith.constant dense<0.000000e+00> : vector<8x128xf32>
    %5 = tpu.matmul %2, %4, %cst {dimension_numbers = #tpu.dot_dimension_numbers<[1], [0], [0], [1], [0, 0, 1, 1], [], []>} : vector<8x32xbf16>, vector<32x128xbf16>, vector<8x128xf32> -> vector<8x128xf32>
    %6 = vector.extract_strided_slice %5 {offsets = [0, 0], sizes = [8, 64], strides = [1, 1]} : vector<8x128xf32> to vector<8x64xf32>
    %7 = vector.extract_strided_slice %5 {offsets = [0, 64], sizes = [8, 64], strides = [1, 1]} : vector<8x128xf32> to vector<8x64xf32>
    %c0_6 = arith.constant 0 : index
    %c0_7 = arith.constant 0 : index
    %c0_8 = arith.constant 0 : index
    %8 = vector.load %arg3[%c0_6, %c0_7, %c0_8] : memref<2x16x64xf32, #tpu.memory_space<vmem>>, vector<1x16x64xf32>
    %9 = vector.shape_cast %8 : vector<1x16x64xf32> to vector<16x64xf32>
    %10 = tpu.concatenate %7, %9 in 0 : vector<8x64xf32>, vector<16x64xf32> -> vector<24x64xf32>
    %11 = arith.truncf %10 : vector<24x64xf32> to vector<24x64xbf16>
    %cst_9 = arith.constant dense<0.000000e+00> : vector<32x64xf32>
    %12 = tpu.matmul %1, %11, %cst_9 {dimension_numbers = #tpu.dot_dimension_numbers<[1], [0], [0], [1], [0, 0, 1, 1], [], []>} : vector<32x24xbf16>, vector<24x64xbf16>, vector<32x64xf32> -> vector<32x64xf32>
    %13 = tpu.concatenate %6, %6, %6, %6 in 0 : vector<8x64xf32>, vector<8x64xf32>, vector<8x64xf32>, vector<8x64xf32> -> vector<32x64xf32>
    %14 = arith.addf %12, %13 : vector<32x64xf32>
    %c0_10 = arith.constant 0 : index
    %c0_11 = arith.constant 0 : index
    %c0_12 = arith.constant 0 : index
    %15 = vector.load %arg4[%c0_10, %c0_11, %c0_12] : memref<2x1x64xf32, #tpu.memory_space<vmem>>, vector<1x1x64xf32>
    %16 = vector.shape_cast %15 : vector<1x1x64xf32> to vector<1x64xf32>
    %17 = vector.broadcast %16 : vector<1x64xf32> to vector<32x64xf32>
    %18 = arith.addf %14, %17 : vector<32x64xf32>
    %cst_13 = arith.constant dense<0.000000e+00> : vector<64xf32>
    %19 = vector.multi_reduction <add>, %18, %cst_13 [0] : vector<32x64xf32> to vector<64xf32>
    %20 = vector.shape_cast %19 : vector<64xf32> to vector<1x64xf32>
    %cst_14 = arith.constant 3.125000e-02 : f32
    %21 = vector.broadcast %cst_14 : f32 to vector<1x64xf32>
    %22 = arith.mulf %20, %21 : vector<1x64xf32>
    %23 = arith.mulf %18, %18 : vector<32x64xf32>
    %cst_15 = arith.constant dense<0.000000e+00> : vector<64xf32>
    %24 = vector.multi_reduction <add>, %23, %cst_15 [0] : vector<32x64xf32> to vector<64xf32>
    %25 = vector.shape_cast %24 : vector<64xf32> to vector<1x64xf32>
    %cst_16 = arith.constant 3.125000e-02 : f32
    %26 = vector.broadcast %cst_16 : f32 to vector<1x64xf32>
    %27 = arith.mulf %25, %26 : vector<1x64xf32>
    %28 = arith.mulf %22, %22 : vector<1x64xf32>
    %29 = arith.subf %27, %28 : vector<1x64xf32>
    %30 = vector.broadcast %22 : vector<1x64xf32> to vector<32x64xf32>
    %31 = arith.subf %18, %30 : vector<32x64xf32>
    %cst_17 = arith.constant 9.99999974E-6 : f32
    %32 = vector.broadcast %cst_17 : f32 to vector<1x64xf32>
    %33 = arith.addf %29, %32 : vector<1x64xf32>
    %34 = math.rsqrt %33 : vector<1x64xf32>
    %35 = vector.broadcast %34 : vector<1x64xf32> to vector<32x64xf32>
    %36 = arith.mulf %31, %35 : vector<32x64xf32>
    %37 = vector.extract_strided_slice %36 {offsets = [0, 0], sizes = [32, 32], strides = [1, 1]} : vector<32x64xf32> to vector<32x32xf32>
    %cst_18 = arith.constant 0.000000e+00 : f32
    %38 = vector.broadcast %cst_18 : f32 to vector<32x32xf32>
    %39 = arith.subf %38, %37 : vector<32x32xf32>
    %40 = math.exp %39 : vector<32x32xf32>
    %cst_19 = arith.constant 1.000000e+00 : f32
    %41 = vector.broadcast %cst_19 : f32 to vector<32x32xf32>
    %42 = arith.addf %41, %40 : vector<32x32xf32>
    %43 = tpu.reciprocal %42 {approx = true} : vector<32x32xf32> -> vector<32x32xf32>
    %44 = vector.extract_strided_slice %36 {offsets = [0, 32], sizes = [32, 32], strides = [1, 1]} : vector<32x64xf32> to vector<32x32xf32>
    %cst_20 = arith.constant 0.000000e+00 : f32
    %45 = vector.broadcast %cst_20 : f32 to vector<32x32xf32>
    %46 = arith.maximumf %44, %45 : vector<32x32xf32>
    %47 = math.absf %44 : vector<32x32xf32>
    %cst_21 = arith.constant 0.000000e+00 : f32
    %48 = vector.broadcast %cst_21 : f32 to vector<32x32xf32>
    %49 = arith.subf %48, %47 : vector<32x32xf32>
    %50 = math.exp %49 : vector<32x32xf32>
    %cst_22 = arith.constant 1.000000e+00 : f32
    %51 = vector.broadcast %cst_22 : f32 to vector<32x32xf32>
    %52 = arith.addf %51, %50 : vector<32x32xf32>
    %53 = math.log %52 : vector<32x32xf32>
    %54 = arith.addf %46, %53 : vector<32x32xf32>
    %55 = arith.mulf %43, %54 : vector<32x32xf32>
    %56 = vector.extract_strided_slice %55 {offsets = [0, 0], sizes = [8, 32], strides = [1, 1]} : vector<32x32xf32> to vector<8x32xf32>
    %57 = vector.extract_strided_slice %55 {offsets = [8, 0], sizes = [8, 32], strides = [1, 1]} : vector<32x32xf32> to vector<8x32xf32>
    %58 = arith.addf %56, %57 : vector<8x32xf32>
    %59 = vector.extract_strided_slice %55 {offsets = [16, 0], sizes = [8, 32], strides = [1, 1]} : vector<32x32xf32> to vector<8x32xf32>
    %60 = arith.addf %58, %59 : vector<8x32xf32>
    %61 = vector.extract_strided_slice %55 {offsets = [24, 0], sizes = [8, 32], strides = [1, 1]} : vector<32x32xf32> to vector<8x32xf32>
    %62 = arith.addf %60, %61 : vector<8x32xf32>
    %cst_23 = arith.constant dense<0.000000e+00> : vector<32xf32>
    %63 = vector.multi_reduction <add>, %62, %cst_23 [0] : vector<8x32xf32> to vector<32xf32>
    %64 = vector.shape_cast %63 : vector<32xf32> to vector<1x32xf32>
    %cst_24 = arith.constant 1.250000e-01 : f32
    %65 = vector.broadcast %cst_24 : f32 to vector<1x32xf32>
    %66 = arith.mulf %64, %65 : vector<1x32xf32>
    %67 = arith.mulf %62, %62 : vector<8x32xf32>
    %cst_25 = arith.constant dense<0.000000e+00> : vector<32xf32>
    %68 = vector.multi_reduction <add>, %67, %cst_25 [0] : vector<8x32xf32> to vector<32xf32>
    %69 = vector.shape_cast %68 : vector<32xf32> to vector<1x32xf32>
    %cst_26 = arith.constant 1.250000e-01 : f32
    %70 = vector.broadcast %cst_26 : f32 to vector<1x32xf32>
    %71 = arith.mulf %69, %70 : vector<1x32xf32>
    %72 = arith.mulf %66, %66 : vector<1x32xf32>
    %73 = arith.subf %71, %72 : vector<1x32xf32>
    %74 = vector.broadcast %66 : vector<1x32xf32> to vector<8x32xf32>
    %75 = arith.subf %62, %74 : vector<8x32xf32>
    %cst_27 = arith.constant 9.99999974E-6 : f32
    %76 = vector.broadcast %cst_27 : f32 to vector<1x32xf32>
    %77 = arith.addf %73, %76 : vector<1x32xf32>
    %78 = math.rsqrt %77 : vector<1x32xf32>
    %79 = vector.broadcast %78 : vector<1x32xf32> to vector<8x32xf32>
    %80 = arith.mulf %75, %79 : vector<8x32xf32>
    %81 = arith.addf %0, %80 : vector<8x32xf32>
    %cst_28 = arith.constant 0.000000e+00 : f32
    %82 = vector.broadcast %cst_28 : f32 to vector<8x32xf32>
    %83 = arith.maximumf %81, %82 : vector<8x32xf32>
    %84 = math.absf %81 : vector<8x32xf32>
    %cst_29 = arith.constant 0.000000e+00 : f32
    %85 = vector.broadcast %cst_29 : f32 to vector<8x32xf32>
    %86 = arith.subf %85, %84 : vector<8x32xf32>
    %87 = math.exp %86 : vector<8x32xf32>
    %cst_30 = arith.constant 1.000000e+00 : f32
    %88 = vector.broadcast %cst_30 : f32 to vector<8x32xf32>
    %89 = arith.addf %88, %87 : vector<8x32xf32>
    %90 = math.log %89 : vector<8x32xf32>
    %91 = arith.addf %83, %90 : vector<8x32xf32>
    %92 = arith.truncf %91 : vector<8x32xf32> to vector<8x32xbf16>
    %c1 = arith.constant 1 : index
    %c0_31 = arith.constant 0 : index
    %c0_32 = arith.constant 0 : index
    %93 = vector.load %arg2[%c1, %c0_31, %c0_32] : memref<2x32x128xbf16, #tpu.memory_space<vmem>>, vector<1x32x128xbf16>
    %94 = vector.shape_cast %93 : vector<1x32x128xbf16> to vector<32x128xbf16>
    %cst_33 = arith.constant dense<0.000000e+00> : vector<8x128xf32>
    %95 = tpu.matmul %92, %94, %cst_33 {dimension_numbers = #tpu.dot_dimension_numbers<[1], [0], [0], [1], [0, 0, 1, 1], [], []>} : vector<8x32xbf16>, vector<32x128xbf16>, vector<8x128xf32> -> vector<8x128xf32>
    %96 = vector.extract_strided_slice %95 {offsets = [0, 0], sizes = [8, 64], strides = [1, 1]} : vector<8x128xf32> to vector<8x64xf32>
    %97 = vector.extract_strided_slice %95 {offsets = [0, 64], sizes = [8, 64], strides = [1, 1]} : vector<8x128xf32> to vector<8x64xf32>
    %c1_34 = arith.constant 1 : index
    %c0_35 = arith.constant 0 : index
    %c0_36 = arith.constant 0 : index
    %98 = vector.load %arg3[%c1_34, %c0_35, %c0_36] : memref<2x16x64xf32, #tpu.memory_space<vmem>>, vector<1x16x64xf32>
    %99 = vector.shape_cast %98 : vector<1x16x64xf32> to vector<16x64xf32>
    %100 = tpu.concatenate %97, %99 in 0 : vector<8x64xf32>, vector<16x64xf32> -> vector<24x64xf32>
    %101 = arith.truncf %100 : vector<24x64xf32> to vector<24x64xbf16>
    %cst_37 = arith.constant dense<0.000000e+00> : vector<32x64xf32>
    %102 = tpu.matmul %1, %101, %cst_37 {dimension_numbers = #tpu.dot_dimension_numbers<[1], [0], [0], [1], [0, 0, 1, 1], [], []>} : vector<32x24xbf16>, vector<24x64xbf16>, vector<32x64xf32> -> vector<32x64xf32>
    %103 = tpu.concatenate %96, %96, %96, %96 in 0 : vector<8x64xf32>, vector<8x64xf32>, vector<8x64xf32>, vector<8x64xf32> -> vector<32x64xf32>
    %104 = arith.addf %102, %103 : vector<32x64xf32>
    %c1_38 = arith.constant 1 : index
    %c0_39 = arith.constant 0 : index
    %c0_40 = arith.constant 0 : index
    %105 = vector.load %arg4[%c1_38, %c0_39, %c0_40] : memref<2x1x64xf32, #tpu.memory_space<vmem>>, vector<1x1x64xf32>
    %106 = vector.shape_cast %105 : vector<1x1x64xf32> to vector<1x64xf32>
    %107 = vector.broadcast %106 : vector<1x64xf32> to vector<32x64xf32>
    %108 = arith.addf %104, %107 : vector<32x64xf32>
    %cst_41 = arith.constant dense<0.000000e+00> : vector<64xf32>
    %109 = vector.multi_reduction <add>, %108, %cst_41 [0] : vector<32x64xf32> to vector<64xf32>
    %110 = vector.shape_cast %109 : vector<64xf32> to vector<1x64xf32>
    %cst_42 = arith.constant 3.125000e-02 : f32
    %111 = vector.broadcast %cst_42 : f32 to vector<1x64xf32>
    %112 = arith.mulf %110, %111 : vector<1x64xf32>
    %113 = arith.mulf %108, %108 : vector<32x64xf32>
    %cst_43 = arith.constant dense<0.000000e+00> : vector<64xf32>
    %114 = vector.multi_reduction <add>, %113, %cst_43 [0] : vector<32x64xf32> to vector<64xf32>
    %115 = vector.shape_cast %114 : vector<64xf32> to vector<1x64xf32>
    %cst_44 = arith.constant 3.125000e-02 : f32
    %116 = vector.broadcast %cst_44 : f32 to vector<1x64xf32>
    %117 = arith.mulf %115, %116 : vector<1x64xf32>
    %118 = arith.mulf %112, %112 : vector<1x64xf32>
    %119 = arith.subf %117, %118 : vector<1x64xf32>
    %120 = vector.broadcast %112 : vector<1x64xf32> to vector<32x64xf32>
    %121 = arith.subf %108, %120 : vector<32x64xf32>
    %cst_45 = arith.constant 9.99999974E-6 : f32
    %122 = vector.broadcast %cst_45 : f32 to vector<1x64xf32>
    %123 = arith.addf %119, %122 : vector<1x64xf32>
    %124 = math.rsqrt %123 : vector<1x64xf32>
    %125 = vector.broadcast %124 : vector<1x64xf32> to vector<32x64xf32>
    %126 = arith.mulf %121, %125 : vector<32x64xf32>
    %127 = vector.extract_strided_slice %126 {offsets = [0, 0], sizes = [32, 32], strides = [1, 1]} : vector<32x64xf32> to vector<32x32xf32>
    %cst_46 = arith.constant 0.000000e+00 : f32
    %128 = vector.broadcast %cst_46 : f32 to vector<32x32xf32>
    %129 = arith.subf %128, %127 : vector<32x32xf32>
    %130 = math.exp %129 : vector<32x32xf32>
    %cst_47 = arith.constant 1.000000e+00 : f32
    %131 = vector.broadcast %cst_47 : f32 to vector<32x32xf32>
    %132 = arith.addf %131, %130 : vector<32x32xf32>
    %133 = tpu.reciprocal %132 {approx = true} : vector<32x32xf32> -> vector<32x32xf32>
    %134 = vector.extract_strided_slice %126 {offsets = [0, 32], sizes = [32, 32], strides = [1, 1]} : vector<32x64xf32> to vector<32x32xf32>
    %cst_48 = arith.constant 0.000000e+00 : f32
    %135 = vector.broadcast %cst_48 : f32 to vector<32x32xf32>
    %136 = arith.maximumf %134, %135 : vector<32x32xf32>
    %137 = math.absf %134 : vector<32x32xf32>
    %cst_49 = arith.constant 0.000000e+00 : f32
    %138 = vector.broadcast %cst_49 : f32 to vector<32x32xf32>
    %139 = arith.subf %138, %137 : vector<32x32xf32>
    %140 = math.exp %139 : vector<32x32xf32>
    %cst_50 = arith.constant 1.000000e+00 : f32
    %141 = vector.broadcast %cst_50 : f32 to vector<32x32xf32>
    %142 = arith.addf %141, %140 : vector<32x32xf32>
    %143 = math.log %142 : vector<32x32xf32>
    %144 = arith.addf %136, %143 : vector<32x32xf32>
    %145 = arith.mulf %133, %144 : vector<32x32xf32>
    %146 = vector.extract_strided_slice %145 {offsets = [0, 0], sizes = [8, 32], strides = [1, 1]} : vector<32x32xf32> to vector<8x32xf32>
    %147 = vector.extract_strided_slice %145 {offsets = [8, 0], sizes = [8, 32], strides = [1, 1]} : vector<32x32xf32> to vector<8x32xf32>
    %148 = arith.addf %146, %147 : vector<8x32xf32>
    %149 = vector.extract_strided_slice %145 {offsets = [16, 0], sizes = [8, 32], strides = [1, 1]} : vector<32x32xf32> to vector<8x32xf32>
    %150 = arith.addf %148, %149 : vector<8x32xf32>
    %151 = vector.extract_strided_slice %145 {offsets = [24, 0], sizes = [8, 32], strides = [1, 1]} : vector<32x32xf32> to vector<8x32xf32>
    %152 = arith.addf %150, %151 : vector<8x32xf32>
    %cst_51 = arith.constant dense<0.000000e+00> : vector<32xf32>
    %153 = vector.multi_reduction <add>, %152, %cst_51 [0] : vector<8x32xf32> to vector<32xf32>
    %154 = vector.shape_cast %153 : vector<32xf32> to vector<1x32xf32>
    %cst_52 = arith.constant 1.250000e-01 : f32
    %155 = vector.broadcast %cst_52 : f32 to vector<1x32xf32>
    %156 = arith.mulf %154, %155 : vector<1x32xf32>
    %157 = arith.mulf %152, %152 : vector<8x32xf32>
    %cst_53 = arith.constant dense<0.000000e+00> : vector<32xf32>
    %158 = vector.multi_reduction <add>, %157, %cst_53 [0] : vector<8x32xf32> to vector<32xf32>
    %159 = vector.shape_cast %158 : vector<32xf32> to vector<1x32xf32>
    %cst_54 = arith.constant 1.250000e-01 : f32
    %160 = vector.broadcast %cst_54 : f32 to vector<1x32xf32>
    %161 = arith.mulf %159, %160 : vector<1x32xf32>
    %162 = arith.mulf %156, %156 : vector<1x32xf32>
    %163 = arith.subf %161, %162 : vector<1x32xf32>
    %164 = vector.broadcast %156 : vector<1x32xf32> to vector<8x32xf32>
    %165 = arith.subf %152, %164 : vector<8x32xf32>
    %cst_55 = arith.constant 9.99999974E-6 : f32
    %166 = vector.broadcast %cst_55 : f32 to vector<1x32xf32>
    %167 = arith.addf %163, %166 : vector<1x32xf32>
    %168 = math.rsqrt %167 : vector<1x32xf32>
    %169 = vector.broadcast %168 : vector<1x32xf32> to vector<8x32xf32>
    %170 = arith.mulf %165, %169 : vector<8x32xf32>
    %171 = arith.addf %91, %170 : vector<8x32xf32>
    %cst_56 = arith.constant 0.000000e+00 : f32
    %172 = vector.broadcast %cst_56 : f32 to vector<8x32xf32>
    %173 = arith.maximumf %171, %172 : vector<8x32xf32>
    %174 = math.absf %171 : vector<8x32xf32>
    %cst_57 = arith.constant 0.000000e+00 : f32
    %175 = vector.broadcast %cst_57 : f32 to vector<8x32xf32>
    %176 = arith.subf %175, %174 : vector<8x32xf32>
    %177 = math.exp %176 : vector<8x32xf32>
    %cst_58 = arith.constant 1.000000e+00 : f32
    %178 = vector.broadcast %cst_58 : f32 to vector<8x32xf32>
    %179 = arith.addf %178, %177 : vector<8x32xf32>
    %180 = math.log %179 : vector<8x32xf32>
    %181 = arith.addf %173, %180 : vector<8x32xf32>
    %c0_59 = arith.constant 0 : index
    %c0_60 = arith.constant 0 : index
    %182 = vector.load %arg5[%c0_59, %c0_60] : memref<8x32xf32, #tpu.memory_space<vmem>>, vector<8x32xf32>
    tpu.vector_store %arg5[%c0_59, %c0_60], %181 {strides = array<i32>} : memref<8x32xf32, #tpu.memory_space<vmem>>, vector<8x32xf32>,
    return
  }
}

</mosaic_0001>

<bundles_post_ra>
// kernel: tpu_custom_call.1
= control target key start
LH: loop header
LB: loop body
LE: loop exit
PB: predicated region body
PF: predicated region fallthrough
CT: control target
= control target key end

     0   :  { %10 = vsyncpa [#allocation3], 0  ;;  %s1118_s0 = inlined_call_operand.hbm [shape: f32[8,32], index: 0, kind: input, shape index: {}]   ;;  %s1119_s1 = inlined_call_operand.vmem [shape: bf16[32,24], index: 1, kind: input, shape index: {}]   ;;  %s1120_s2 = inlined_call_operand.vmem [shape: bf16[2,32,128], index: 2, kind: input, shape index: {}]   ;;  %s1121_s3 = inlined_call_operand.hbm [shape: f32[2,16,64], index: 3, kind: input, shape index: {}]   ;;  %s1122_s4 = inlined_call_operand.vmem [shape: f32[2,1,64], index: 4, kind: input, shape index: {}]   ;;  %s1123_s5 = inlined_call_operand.hbm [shape: f32[8,32], index: 5, kind: output, shape index: {}]  }
   0x1   :  { %11 = vsyncpa [#allocation6], 0 }
   0x2   :  { %12 = vsyncpa [#allocation4], 0  ;;  %s923_s18 = smov [#allocation2]   ;;  %s924_s20 = smov [#allocation5]  }
   0x3   :  { %s19_s19 = sshll.u32 %s923_s18, 4  ;;  %s32_s21 = sshll.u32 %s924_s20, 4  ;;  %s20_s19 = int_to_ptr.vmem [resolvable:$true] %s19_s19  ;;  %s962_s21 = int_to_ptr.vmem [resolvable:$true] %s32_s21 }
   0x4   :  { %s851_s24 = scalar_lea.hbm %s1118_s0, 128 }
   0x5   :  { %p852_p0 = scmp.ne.s32.totalorder %s1118_s0, %s851_s24  ;;  %p855_p1 = scmp.lt.u32.totalorder %s851_s24, %s1118_s0 }
   0x7   :  { %p857_p2 = pnand %p855_p1, %p852_p0 }
   0x9   :  { %860 = shalt.err (!%p857_p2)
}
   0xa   :  { %s861_s29 = scalar_lea.vmem %s20_s19, 128  ;;  %p866_p4 = scmp.lt.s32.totalorder %s20_s19, %s20_s19 }
   0xb   :  { %p862_p3 = scmp.ne.s32.totalorder %s20_s19, %s861_s29  ;;  %p867_p5 = scmp.lt.s32.totalorder %s861_s29, %s861_s29 }
   0xd   :  { %p868_p6 = por %p867_p5, %p866_p4 }
   0xf   :  { %p869_p7 = pnand %p868_p6, %p862_p3 }
  0x11   :  { %872 = shalt.err (!%p869_p7)
}
  0x12   :  { %22 = dma.hbm_to_vmem [thread:$0]  %s1118_s0, 128, %s20_s19, [#allocation3]  }
  0x13   :  { %s873_s9 = scalar_lea.hbm %s1121_s3, 512 }
  0x14   :  { %p874_p8 = scmp.ne.s32.totalorder %s1121_s3, %s873_s9  ;;  %p877_p9 = scmp.lt.u32.totalorder %s873_s9, %s1121_s3 }
  0x16   :  { %p879_p10 = pnand %p877_p9, %p874_p8 }
  0x18   :  { %882 = shalt.err (!%p879_p10)
}
  0x19   :  { %s883_s14 = scalar_lea.vmem %s962_s21, 512  ;;  %p888_p12 = scmp.lt.s32.totalorder %s962_s21, %s962_s21 }
  0x1a   :  { %p884_p11 = scmp.ne.s32.totalorder %s962_s21, %s883_s14  ;;  %p889_p13 = scmp.lt.s32.totalorder %s883_s14, %s883_s14 }
  0x1c   :  { %p890_p0 = por %p889_p13, %p888_p12 }
  0x1e   :  { %p891_p1 = pnand %p890_p0, %p884_p11 }
  0x20   :  { %894 = shalt.err (!%p891_p1)
}
  0x21   :  { %s925_s0 = smov 128   ;;  %s926_s15 = smov 8  }
  0x22   :  { %38 = dma.hbm_to_vmem [thread:$0]  %s1121_s3, 512, %s962_s21, [#allocation6], %s925_s0, %s925_s0, %s926_s15  }
  0x23   :  { %917 = dma.done.wait [#allocation3], 128  }
  0x24   :  { %918 = vsyncadd [#allocation3], 4294967168 }
  0x25   :  { %919 = dma.done.wait [#allocation6], 512  }
  0x26   :  { %920 = vsyncadd [#allocation6], 4294966784  ;;  %v927_v0 = vmov 0.0   ;;  %vm928_vm0 = vmmov 0   ;;  %v765_v1 = vld [vmem:[%s1120_s2] sm:$0xff]   ;;  %v766_v2 = vld [vmem:[%s1120_s2 + $0x8] sm:$0xff]  }
  0x27   :  { %722 = vmatprep.subr.bf16.mxu0 %v927_v0  ;;  %726 = vmatprep.mubr.msk.bf16.mxu0 %vm928_vm0, %v927_v0  ;;  %v1002_v3 = vld [vmem:[#allocation2] sm:$0xff]  ;;  %v114_v4 = vld [vmem:[#allocation5] sm:$0xff]  ;;  %v115_v5 = vld [vmem:[#allocation5 + $0x8] sm:$0xff]  ;;  %s929_s3 = smov 64   ;;  %vm70_vm1 = vcmask 261120   ;;  %vm143_vm2 = vcmask 195584  }
  0x28   :  { %723 = vmatpush3.bf16.msra.mxu0 %v765_v1  ;;  %118 = vrot.lane.b32.xlu0 %v114_v4, %s929_s3  ;;  %v53_v6 = vpack.c.bf16 %v1002_v3, %v1002_v3  ;;  %v767_v8 = vld [vmem:[%s1119_s1] sm:$0xff]   ;;  %vm150_vm3 = vcmask 1043456   ;;  %v1024_v19 = vld [vmem:[%s1119_s1 + $0x8] sm:$0xff]   ;;  %vm214_vm4 = vcmask 523264   ;;  %s930_s1 = smov 96  }
  0x29   :  { %724 = vmatprep.subr.bf16.mxu0 %v927_v0  ;;  %734 = vmatprep.mubr.msk.bf16.mxu1 %vm143_vm2, %v767_v8  ;;  %v696_v22 = vld [vmem:[%s1122_s4] ss:$0 sm:$0xff] }
  0x2c   :  { %725 = vmatpush3.bf16.msra.mxu0 %v766_v2  ;;  %120 = vrot.lane.b32.xlu0 %v115_v5, %s929_s3 }
  0x2d   :  { %738 = vmatprep.subr.bf16.mxu0 %v927_v0 }
  0x2f   :  { %727 = vmatmul.mubr.msk.bf16.vlgmr.msra.gmra.mrb[0].mxu0 %vm70_vm1, %v53_v6 }
  0x30   :  { %742 = vmatprep.mubr.msk.bf16.mxu0 %vm928_vm0, %v927_v0 }
  0x9a   :  { %v119_v7 = vpop.permute.xlu0 %118 }
  0x9e   :  { %v121_v10 = vpop.permute.xlu0 %120 }
  0x9f   :  { %v125_v15 = vpack.c.bf16 %v121_v10, %v121_v10 }
 0x102   :  { %v108_v9 = vpop.f32.mrb[0].mxu0 }
 0x103   :  { %v728_v11 = vpop.f32.mrb[1].mxu0  ;;  %v124_v12 = vpack.c.bf16 %v119_v7, %v108_v9 }
 0x104   :  { %v111_v13 = vpop.f32.mrb[2].mxu0 }
 0x105   :  { %138 = vrot.lane.b32.xlu1 %v124_v12, %s929_s3  ;;  %v729_v14 = vpop.f32.mrb[3].mxu0 }
 0x109   :  { %140 = vrot.lane.b32.xlu1 %v125_v15, %s929_s3 }
 0x177   :  { %v139_v16 = vpop.permute.xlu1 %138 }
 0x178   :  { %730 = vmatprep.subr.bf16.mxu1 %v139_v16 }
 0x179   :  { %731 = vmatpush3.bf16.msra.mxu1 %v139_v16 }
 0x17b   :  { %v141_v17 = vpop.permute.xlu1 %140 }
 0x17c   :  { %754 = vmatprep.subr.msk.bf16.mxu1 %vm150_vm3, %v141_v17  ;;  %v152_v18 = vsel %vm150_vm3, %v141_v17, 0 }
 0x17d   :  { %733 = vmatpush3.bf16.msra.mxu1 %v152_v18 }
 0x180   :  { %735 = vmatmul.mubr.msk.bf16.vlgmr.msra.gmra.mrb[0].mxu1 %vm143_vm2, %v1024_v19 }
 0x181   :  { %750 = vmatprep.mubr.msk.bf16.mxu1 %vm143_vm2, %v767_v8 }
 0x253   :  { %v736_v20 = vpop.f32.mrb[0].mxu1 }
 0x254   :  { %v197_v21 = vadd.f32 %v736_v20, %v108_v9  ;;  %v188_v23 = vpop.f32.mrb[1].mxu1 }
 0x255   :  { %v189_v24 = vadd.f32 %v188_v23, %v108_v9  ;;  %v737_v25 = vpop.f32.mrb[2].mxu1 }
 0x256   :  { %v200_v26 = vadd.f32 %v737_v25, %v108_v9  ;;  %v191_v27 = vpop.f32.mrb[3].mxu1  ;;  %v212_v28 = vadd.f32 %v696_v22, %v197_v21 }
 0x257   :  { %v210_v29 = vadd.f32 %v696_v22, %v189_v24  ;;  %v192_v30 = vadd.f32 %v191_v27, %v108_v9 }
 0x258   :  { %v213_v32 = vadd.f32 %v696_v22, %v200_v26  ;;  %v231_v34 = vmul.f32 %v212_v28, %v212_v28  ;;  %v218_v39 = vsel %vm214_vm4, %v212_v28, 0.0 }
 0x259   :  { %v229_v31 = vmul.f32 %v210_v29, %v210_v29  ;;  %v211_v33 = vadd.f32 %v696_v22, %v192_v30  ;;  %v215_v35 = vsel %vm214_vm4, %v210_v29, 0.0 }
 0x25a   :  { %v232_v41 = vmul.f32 %v213_v32, %v213_v32  ;;  %v236_v45 = vsel %vm214_vm4, %v231_v34, 0.0  ;;  %v220_v46 = vsel %vm214_vm4, %v213_v32, 0.0 }
 0x25b   :  { %v216_v36 = vsel %vm214_vm4, %v211_v33, 0.0  ;;  %v230_v37 = vmul.f32 %v211_v33, %v211_v33  ;;  %v233_v40 = vsel %vm214_vm4, %v229_v31, 0.0 }
 0x25c   :  { %v217_v38 = vadd.f32 %v216_v36, %v215_v35  ;;  %v238_v49 = vsel %vm214_vm4, %v232_v41, 0.0 }
 0x25d   :  { %v234_v42 = vsel %vm214_vm4, %v230_v37, 0.0 }
 0x25e   :  { %v219_v43 = vadd.f32 %v218_v39, %v217_v38  ;;  %v235_v44 = vadd.f32 %v234_v42, %v233_v40 }
 0x260   :  { %v221_v47 = vadd.f32 %v220_v46, %v219_v43  ;;  %v237_v48 = vadd.f32 %v236_v45, %v235_v44 }
 0x262   :  { %v222_v50 = vrot.slane %v221_v47, 4  ;;  %v239_v51 = vadd.f32 %v238_v49, %v237_v48 }
 0x264   :  { %v223_v52 = vadd.f32 %v222_v50, %v221_v47  ;;  %v240_v53 = vrot.slane %v239_v51, 4 }
 0x266   :  { %v224_v54 = vrot.slane %v223_v52, 2  ;;  %v241_v55 = vadd.f32 %v240_v53, %v239_v51  ;;  %v770_v53 = vld [vmem:[%s1120_s2 + $0x18] sm:$0xff]  }
 0x268   :  { %v225_v56 = vadd.f32 %v224_v54, %v223_v52  ;;  %v242_v57 = vrot.slane %v241_v55, 2  ;;  %v769_v52 = vld [vmem:[%s1120_s2 + $0x10] sm:$0xff]   ;;  %v433_v54 = vld [vmem:[#allocation5 + $0x10] sm:$0xff] }
 0x269   :  { %739 = vmatpush3.bf16.msra.mxu0 %v769_v52 }
 0x26a   :  { %v226_v58 = vrot.slane %v225_v56, 1  ;;  %v243_v59 = vadd.f32 %v242_v57, %v241_v55  ;;  %740 = vmatprep.subr.bf16.mxu0 %v927_v0  ;;  %v434_v55 = vld [vmem:[#allocation5 + $0x18] sm:$0xff] }
 0x26c   :  { %v227_v60 = vadd.f32 %v226_v58, %v225_v56  ;;  %v244_v61 = vrot.slane %v243_v59, 1 }
 0x26d   :  { %741 = vmatpush3.bf16.msra.mxu0 %v770_v53 }
 0x26e   :  { %v228_v62 = vmul.f32 0.03125, %v227_v60  ;;  %v245_v63 = vadd.f32 %v244_v61, %v243_v59 }
 0x270   :  { %v246_v1 = vmul.f32 0.03125, %v245_v63  ;;  %v247_v2 = vmul.f32 %v228_v62, %v228_v62  ;;  %v250_v4 = vsub.f32 %v211_v33, %v228_v62  ;;  %v249_v5 = vsub.f32 %v210_v29, %v228_v62 }
 0x271   :  { %v252_v6 = vsub.f32 %v213_v32, %v228_v62  ;;  %v251_v7 = vsub.f32 %v212_v28, %v228_v62 }
 0x272   :  { %v248_v8 = vsub.f32 %v246_v1, %v247_v2 }
 0x274   :  { %v253_v9 = vadd.f32 1e-05, %v248_v8 }
 0x276   :  { %771 = vrsqrt.f32 %v253_v9 }
 0x280   :  { %v772_v10 = vpop.eup %771 }
 0x281   :  { %v1040_v11 = vmul.f32 %v772_v10, %v250_v4  ;;  %v1042_v12 = vmul.f32 %v772_v10, %v249_v5  ;;  %v1044_v13 = vmul.f32 %v772_v10, %v252_v6  ;;  %v1046_v14 = vmul.f32 %v772_v10, %v251_v7 }
 0x283   :  { %v284_v15 = vand.u32 2147483647, %v1040_v11  ;;  %v283_v16 = vand.u32 2147483647, %v1042_v12  ;;  %v286_v18 = vand.u32 2147483647, %v1044_v13 }
 0x284   :  { %v285_v21 = vand.u32 2147483647, %v1046_v14  ;;  %v280_v38 = vmax.f32 %v1040_v11, 0.0  ;;  %v279_v41 = vmax.f32 %v1042_v12, 0.0  ;;  %v282_v48 = vmax.f32 %v1044_v13, 0.0 }
 0x285   :  { %v288_v17 = vsub.f32 0.0, %v284_v15  ;;  %v287_v20 = vsub.f32 0.0, %v283_v16  ;;  %v290_v23 = vsub.f32 0.0, %v286_v18  ;;  %v281_v49 = vmax.f32 %v1046_v14, 0.0 }
 0x286   :  { %v289_v25 = vsub.f32 0.0, %v285_v21  ;;  %v260_v56 = vsub.f32 0.0, %v1040_v11  ;;  %v259_v57 = vsub.f32 0.0, %v1042_v12  ;;  %v261_v59 = vsub.f32 0.0, %v1046_v14 }
 0x287   :  { %v293_v22 = vmul.f32 1.442695, %v288_v17  ;;  %v291_v24 = vmul.f32 1.442695, %v287_v20  ;;  %v297_v26 = vmul.f32 1.442695, %v290_v23 }
 0x288   :  { %v295_v27 = vmul.f32 1.442695, %v289_v25  ;;  %v265_v58 = vmul.f32 1.442695, %v260_v56  ;;  %v263_v60 = vmul.f32 1.442695, %v259_v57 }
 0x289   :  { %773 = vpow2.f32 %v293_v22  ;;  %v262_v61 = vsub.f32 0.0, %v1044_v13  ;;  %v267_v0 = vmul.f32 1.442695, %v261_v59 }
 0x28a   :  { %775 = vpow2.f32 %v291_v24 }
 0x28b   :  { %777 = vpow2.f32 %v297_v26  ;;  %v269_v62 = vmul.f32 1.442695, %v262_v61 }
 0x28c   :  { %779 = vpow2.f32 %v295_v27 }
 0x293   :  { %v774_v28 = vpop.eup %773 }
 0x294   :  { %v776_v29 = vpop.eup %775  ;;  %v300_v30 = vadd.f32 1.0, %v774_v28 }
 0x295   :  { %v778_v31 = vpop.eup %777  ;;  %v299_v32 = vadd.f32 1.0, %v776_v29 }
 0x296   :  { %v780_v33 = vpop.eup %779  ;;  %781 = vlog2.f32 %v300_v30  ;;  %v302_v34 = vadd.f32 1.0, %v778_v31 }
 0x297   :  { %783 = vlog2.f32 %v299_v32  ;;  %v301_v35 = vadd.f32 1.0, %v780_v33 }
 0x298   :  { %785 = vlog2.f32 %v302_v34 }
 0x299   :  { %787 = vlog2.f32 %v301_v35 }
 0x29a   :  { %789 = vpow2.f32 %v265_v58 }
 0x29b   :  { %791 = vpow2.f32 %v263_v60 }
 0x29c   :  { %793 = vpow2.f32 %v267_v0 }
 0x29d   :  { %795 = vpow2.f32 %v269_v62 }
 0x2a0   :  { %v782_v36 = vpop.eup %781 }
 0x2a1   :  { %v784_v37 = vpop.eup %783  ;;  %v306_v39 = vmul.f32 0.6931472, %v782_v36 }
 0x2a2   :  { %v786_v40 = vpop.eup %785  ;;  %v304_v42 = vmul.f32 0.6931472, %v784_v37 }
 0x2a3   :  { %v788_v43 = vpop.eup %787  ;;  %v312_v44 = vadd.f32 %v306_v39, %v280_v38  ;;  %v310_v45 = vmul.f32 0.6931472, %v786_v40 }
 0x2a4   :  { %v311_v46 = vadd.f32 %v304_v42, %v279_v41  ;;  %v308_v47 = vmul.f32 0.6931472, %v788_v43  ;;  %v790_v63 = vpop.eup %789 }
 0x2a5   :  { %321 = vrot.lane.b32.xlu1 %v312_v44, %s930_s1  ;;  %v314_v50 = vadd.f32 %v310_v45, %v282_v48  ;;  %v792_v1 = vpop.eup %791  ;;  %v272_v2 = vadd.f32 1.0, %v790_v63 }
 0x2a6   :  { %319 = vrot.lane.b32.xlu0 %v311_v46, %s930_s1  ;;  %v313_v51 = vadd.f32 %v308_v47, %v281_v49  ;;  %v271_v4 = vadd.f32 1.0, %v792_v1  ;;  %v794_v5 = vpop.eup %793 }
 0x2a7   :  { %v796_v6 = vpop.eup %795  ;;  %797 = vrcp.f32 %v272_v2  ;;  %v273_v7 = vadd.f32 1.0, %v794_v5 }
 0x2a8   :  { %799 = vrcp.f32 %v271_v4  ;;  %v274_v8 = vadd.f32 1.0, %v796_v6 }
 0x2a9   :  { %325 = vrot.lane.b32.xlu1 %v314_v50, %s930_s1  ;;  %801 = vrcp.f32 %v273_v7 }
 0x2aa   :  { %323 = vrot.lane.b32.xlu0 %v313_v51, %s930_s1  ;;  %803 = vrcp.f32 %v274_v8  ;;  %v707_v8 = vld [vmem:[%s1122_s4 + $0x1] ss:$0 sm:$0xff]  ;;  %s931_s4 = smov [#allocation7]  }
 0x2ab   :  { %s679_s8 = sshll.u32 %s931_s4, 4  ;;  %s680_s8 = int_to_ptr.vmem [resolvable:$true] %s679_s8 }
 0x2ac   :  { %s895_s9 = scalar_lea.vmem %s680_s8, 128  ;;  %p900_p3 = scmp.lt.s32.totalorder %s680_s8, %s680_s8 }
 0x2ad   :  { %439 = vrot.lane.b32.xlu1 %v434_v55, %s929_s3  ;;  %p896_p2 = scmp.ne.s32.totalorder %s680_s8, %s895_s9  ;;  %p901_p4 = scmp.lt.s32.totalorder %s895_s9, %s895_s9 }
 0x2ae   :  { %437 = vrot.lane.b32.xlu0 %v433_v54, %s929_s3 }
 0x2af   :  { %p902_p5 = por %p901_p4, %p900_p3 }
 0x2b1   :  { %v798_v9 = vpop.eup %797  ;;  %p903_p6 = pnand %p902_p5, %p896_p2 }
 0x2b2   :  { %v800_v11 = vpop.eup %799 }
 0x2b3   :  { %v802_v16 = vpop.eup %801 }
 0x2b4   :  { %v804_v21 = vpop.eup %803 }
 0x317   :  { %v322_v10 = vpop.permute.xlu1 %321 }
 0x318   :  { %v332_v12 = vmul.f32 %v798_v9, %v322_v10  ;;  %v320_v13 = vpop.permute.xlu0 %319 }
 0x319   :  { %v331_v14 = vmul.f32 %v800_v11, %v320_v13 }
 0x31b   :  { %v335_v15 = vadd.f32 %v332_v12, %v331_v14  ;;  %v326_v17 = vpop.permute.xlu1 %325 }
 0x31c   :  { %v324_v18 = vpop.permute.xlu0 %323  ;;  %v334_v22 = vmul.f32 %v804_v21, %v326_v17 }
 0x31d   :  { %v333_v20 = vmul.f32 %v802_v16, %v324_v18 }
 0x31f   :  { %v336_v23 = vadd.f32 %v335_v15, %v333_v20  ;;  %v440_v59 = vpop.permute.xlu1 %439 }
 0x320   :  { %v444_v60 = vpack.c.bf16 %v440_v59, %v440_v59 }
 0x321   :  { %v337_v24 = vadd.f32 %v336_v23, %v334_v22 }
 0x322   :  { %449 = vrot.lane.b32.xlu1 %v444_v60, %s929_s3 }
 0x323   :  { %v338_v25 = vsel %vm70_vm1, %v337_v24, 0.0  ;;  %v346_v26 = vmul.f32 %v337_v24, %v337_v24 }
 0x324   :  { %v339_v27 = vrot.slane %v338_v25, 4 }
 0x325   :  { %v347_v28 = vsel %vm70_vm1, %v346_v26, 0.0 }
 0x326   :  { %v340_v29 = vadd.f32 %v339_v27, %v338_v25  ;;  %v348_v30 = vrot.slane %v347_v28, 4 }
 0x328   :  { %v341_v31 = vrot.slane %v340_v29, 2  ;;  %v349_v32 = vadd.f32 %v348_v30, %v347_v28 }
 0x32a   :  { %v342_v33 = vadd.f32 %v341_v31, %v340_v29  ;;  %v350_v34 = vrot.slane %v349_v32, 2 }
 0x32c   :  { %v343_v35 = vrot.slane %v342_v33, 1  ;;  %v351_v36 = vadd.f32 %v350_v34, %v349_v32 }
 0x32e   :  { %v344_v37 = vadd.f32 %v343_v35, %v342_v33  ;;  %v352_v38 = vrot.slane %v351_v36, 1 }
 0x330   :  { %v345_v39 = vmul.f32 0.125, %v344_v37  ;;  %v353_v40 = vadd.f32 %v352_v38, %v351_v36 }
 0x332   :  { %v354_v41 = vmul.f32 0.125, %v353_v40  ;;  %v355_v42 = vmul.f32 %v345_v39, %v345_v39  ;;  %v357_v45 = vsub.f32 %v337_v24, %v345_v39 }
 0x334   :  { %v356_v43 = vsub.f32 %v354_v41, %v355_v42 }
 0x336   :  { %v358_v44 = vadd.f32 1e-05, %v356_v43 }
 0x338   :  { %805 = vrsqrt.f32 %v358_v44 }
 0x342   :  { %v806_v46 = vpop.eup %805 }
 0x343   :  { %v360_v47 = vmul.f32 %v806_v46, %v357_v45 }
 0x345   :  { %v361_v48 = vadd.f32 %v360_v47, %v1002_v3  ;;  %v438_v3 = vpop.permute.xlu0 %437 }
 0x347   :  { %v363_v49 = vand.u32 2147483647, %v361_v48  ;;  %v362_v55 = vmax.f32 %v361_v48, 0.0 }
 0x349   :  { %v364_v50 = vsub.f32 0.0, %v363_v49 }
 0x34b   :  { %v365_v51 = vmul.f32 1.442695, %v364_v50 }
 0x34d   :  { %807 = vpow2.f32 %v365_v51 }
 0x357   :  { %v808_v52 = vpop.eup %807 }
 0x358   :  { %v367_v53 = vadd.f32 1.0, %v808_v52 }
 0x35a   :  { %809 = vlog2.f32 %v367_v53 }
 0x364   :  { %v810_v54 = vpop.eup %809 }
 0x365   :  { %v369_v56 = vmul.f32 0.6931472, %v810_v54 }
 0x367   :  { %v1076_v57 = vadd.f32 %v369_v56, %v362_v55 }
 0x369   :  { %v371_v58 = vpack.c.bf16 %v1076_v57, %v1076_v57 }
 0x36b   :  { %743 = vmatmul.mubr.msk.bf16.vlgmr.msra.gmra.mrb[4].mxu0 %vm70_vm1, %v371_v58 }
 0x394   :  { %v450_v4 = vpop.permute.xlu1 %449 }
 0x395   :  { %v453_v5 = vsel %vm150_vm3, %v450_v4, 0 }
 0x43e   :  { %v426_v61 = vpop.f32.mrb[4].mxu0 }
 0x43f   :  { %v744_v0 = vpop.f32.mrb[5].mxu0  ;;  %v443_v62 = vpack.c.bf16 %v438_v3, %v426_v61 }
 0x440   :  { %v429_v63 = vpop.f32.mrb[6].mxu0 }
 0x441   :  { %447 = vrot.lane.b32.xlu0 %v443_v62, %s929_s3  ;;  %v745_v1 = vpop.f32.mrb[7].mxu0 }
 0x4b3   :  { %v448_v2 = vpop.permute.xlu0 %447 }
 0x4b4   :  { %746 = vmatprep.subr.bf16.mxu1 %v448_v2 }
 0x4b5   :  { %747 = vmatpush3.bf16.msra.mxu1 %v448_v2 }
 0x4b6   :  { %755 = vmatprep.subr.msk.bf16.mxu1 %vm150_vm3, %v450_v4 }
 0x4b9   :  { %749 = vmatpush3.bf16.msra.mxu1 %v453_v5 }
 0x4bc   :  { %751 = vmatmul.mubr.msk.bf16.vlgmr.msra.gmra.mrb[4].mxu1 %vm143_vm2, %v1024_v19 }
 0x58f   :  { %v752_v6 = vpop.f32.mrb[4].mxu1 }
 0x590   :  { %v498_v7 = vadd.f32 %v752_v6, %v426_v61  ;;  %v489_v9 = vpop.f32.mrb[5].mxu1 }
 0x591   :  { %v490_v10 = vadd.f32 %v489_v9, %v426_v61  ;;  %v753_v11 = vpop.f32.mrb[6].mxu1 }
 0x592   :  { %v501_v12 = vadd.f32 %v753_v11, %v426_v61  ;;  %v492_v13 = vpop.f32.mrb[7].mxu1  ;;  %v514_v14 = vadd.f32 %v707_v8, %v498_v7 }
 0x593   :  { %v512_v15 = vadd.f32 %v707_v8, %v490_v10  ;;  %v493_v16 = vadd.f32 %v492_v13, %v426_v61 }
 0x594   :  { %v515_v18 = vadd.f32 %v707_v8, %v501_v12  ;;  %v532_v21 = vmul.f32 %v514_v14, %v514_v14  ;;  %v519_v25 = vsel %vm214_vm4, %v514_v14, 0.0 }
 0x595   :  { %v530_v17 = vmul.f32 %v512_v15, %v512_v15  ;;  %v513_v20 = vadd.f32 %v707_v8, %v493_v16  ;;  %v516_v19 = vsel %vm214_vm4, %v512_v15, 0.0 }
 0x596   :  { %v533_v27 = vmul.f32 %v515_v18, %v515_v18  ;;  %v537_v31 = vsel %vm214_vm4, %v532_v21, 0.0  ;;  %v521_v32 = vsel %vm214_vm4, %v515_v18, 0.0 }
 0x597   :  { %v517_v22 = vsel %vm214_vm4, %v513_v20, 0.0  ;;  %v531_v23 = vmul.f32 %v513_v20, %v513_v20  ;;  %v534_v26 = vsel %vm214_vm4, %v530_v17, 0.0 }
 0x598   :  { %v518_v24 = vadd.f32 %v517_v22, %v516_v19  ;;  %v539_v35 = vsel %vm214_vm4, %v533_v27, 0.0 }
 0x599   :  { %v535_v28 = vsel %vm214_vm4, %v531_v23, 0.0 }
 0x59a   :  { %v520_v29 = vadd.f32 %v519_v25, %v518_v24  ;;  %v536_v30 = vadd.f32 %v535_v28, %v534_v26 }
 0x59c   :  { %v522_v33 = vadd.f32 %v521_v32, %v520_v29  ;;  %v538_v34 = vadd.f32 %v537_v31, %v536_v30 }
 0x59e   :  { %v523_v36 = vrot.slane %v522_v33, 4  ;;  %v540_v37 = vadd.f32 %v539_v35, %v538_v34 }
 0x5a0   :  { %v524_v38 = vadd.f32 %v523_v36, %v522_v33  ;;  %v541_v39 = vrot.slane %v540_v37, 4 }
 0x5a2   :  { %v525_v40 = vrot.slane %v524_v38, 2  ;;  %v542_v41 = vadd.f32 %v541_v39, %v540_v37 }
 0x5a4   :  { %v526_v42 = vadd.f32 %v525_v40, %v524_v38  ;;  %v543_v43 = vrot.slane %v542_v41, 2 }
 0x5a6   :  { %v527_v44 = vrot.slane %v526_v42, 1  ;;  %v544_v45 = vadd.f32 %v543_v43, %v542_v41 }
 0x5a8   :  { %v528_v46 = vadd.f32 %v527_v44, %v526_v42  ;;  %v545_v47 = vrot.slane %v544_v45, 1 }
 0x5aa   :  { %v529_v48 = vmul.f32 0.03125, %v528_v46  ;;  %v546_v49 = vadd.f32 %v545_v47, %v544_v45 }
 0x5ac   :  { %v547_v50 = vmul.f32 0.03125, %v546_v49  ;;  %v548_v51 = vmul.f32 %v529_v48, %v529_v48  ;;  %v551_v52 = vsub.f32 %v513_v20, %v529_v48  ;;  %v550_v53 = vsub.f32 %v512_v15, %v529_v48 }
 0x5ad   :  { %v553_v54 = vsub.f32 %v515_v18, %v529_v48  ;;  %v552_v55 = vsub.f32 %v514_v14, %v529_v48 }
 0x5ae   :  { %v549_v56 = vsub.f32 %v547_v50, %v548_v51 }
 0x5b0   :  { %v554_v58 = vadd.f32 1e-05, %v549_v56 }
 0x5b2   :  { %811 = vrsqrt.f32 %v554_v58 }
 0x5bc   :  { %v812_v59 = vpop.eup %811 }
 0x5bd   :  { %v557_v60 = vmul.f32 %v812_v59, %v551_v52  ;;  %v556_v3 = vmul.f32 %v812_v59, %v550_v53  ;;  %v559_v61 = vmul.f32 %v812_v59, %v553_v54  ;;  %v558_v0 = vmul.f32 %v812_v59, %v552_v55 }
 0x5bf   :  { %v585_v62 = vand.u32 2147483647, %v557_v60  ;;  %v584_v63 = vand.u32 2147483647, %v556_v3  ;;  %v587_v2 = vand.u32 2147483647, %v559_v61 }
 0x5c0   :  { %v586_v5 = vand.u32 2147483647, %v558_v0  ;;  %v581_v22 = vmax.f32 %v557_v60, 0.0  ;;  %v580_v25 = vmax.f32 %v556_v3, 0.0  ;;  %v583_v32 = vmax.f32 %v559_v61, 0.0 }
 0x5c1   :  { %v589_v1 = vsub.f32 0.0, %v585_v62  ;;  %v588_v4 = vsub.f32 0.0, %v584_v63  ;;  %v591_v7 = vsub.f32 0.0, %v587_v2  ;;  %v582_v33 = vmax.f32 %v558_v0, 0.0 }
 0x5c2   :  { %v590_v9 = vsub.f32 0.0, %v586_v5  ;;  %v561_v36 = vsub.f32 0.0, %v557_v60  ;;  %v560_v37 = vsub.f32 0.0, %v556_v3  ;;  %v562_v39 = vsub.f32 0.0, %v558_v0 }
 0x5c3   :  { %v594_v6 = vmul.f32 1.442695, %v589_v1  ;;  %v592_v8 = vmul.f32 1.442695, %v588_v4  ;;  %v598_v10 = vmul.f32 1.442695, %v591_v7 }
 0x5c4   :  { %v596_v11 = vmul.f32 1.442695, %v590_v9  ;;  %v566_v38 = vmul.f32 1.442695, %v561_v36  ;;  %v564_v40 = vmul.f32 1.442695, %v560_v37 }
 0x5c5   :  { %813 = vpow2.f32 %v594_v6  ;;  %v563_v41 = vsub.f32 0.0, %v559_v61  ;;  %v568_v42 = vmul.f32 1.442695, %v562_v39 }
 0x5c6   :  { %815 = vpow2.f32 %v592_v8 }
 0x5c7   :  { %817 = vpow2.f32 %v598_v10  ;;  %v570_v43 = vmul.f32 1.442695, %v563_v41 }
 0x5c8   :  { %819 = vpow2.f32 %v596_v11 }
 0x5cf   :  { %v814_v12 = vpop.eup %813 }
 0x5d0   :  { %v816_v13 = vpop.eup %815  ;;  %v601_v14 = vadd.f32 1.0, %v814_v12 }
 0x5d1   :  { %v818_v15 = vpop.eup %817  ;;  %v600_v16 = vadd.f32 1.0, %v816_v13 }
 0x5d2   :  { %v820_v17 = vpop.eup %819  ;;  %821 = vlog2.f32 %v601_v14  ;;  %v603_v18 = vadd.f32 1.0, %v818_v15 }
 0x5d3   :  { %823 = vlog2.f32 %v600_v16  ;;  %v602_v20 = vadd.f32 1.0, %v820_v17 }
 0x5d4   :  { %825 = vlog2.f32 %v603_v18 }
 0x5d5   :  { %827 = vlog2.f32 %v602_v20 }
 0x5d6   :  { %829 = vpow2.f32 %v566_v38 }
 0x5d7   :  { %831 = vpow2.f32 %v564_v40 }
 0x5d8   :  { %833 = vpow2.f32 %v568_v42 }
 0x5d9   :  { %835 = vpow2.f32 %v570_v43 }
 0x5dc   :  { %v822_v21 = vpop.eup %821 }
 0x5dd   :  { %v824_v19 = vpop.eup %823  ;;  %v607_v23 = vmul.f32 0.6931472, %v822_v21 }
 0x5de   :  { %v826_v24 = vpop.eup %825  ;;  %v605_v26 = vmul.f32 0.6931472, %v824_v19 }
 0x5df   :  { %v828_v27 = vpop.eup %827  ;;  %v613_v28 = vadd.f32 %v607_v23, %v581_v22  ;;  %v611_v29 = vmul.f32 0.6931472, %v826_v24 }
 0x5e0   :  { %v612_v30 = vadd.f32 %v605_v26, %v580_v25  ;;  %v609_v31 = vmul.f32 0.6931472, %v828_v27  ;;  %v830_v44 = vpop.eup %829 }
 0x5e1   :  { %622 = vrot.lane.b32.xlu1 %v613_v28, %s930_s1  ;;  %v615_v34 = vadd.f32 %v611_v29, %v583_v32  ;;  %v832_v45 = vpop.eup %831  ;;  %v573_v46 = vadd.f32 1.0, %v830_v44 }
 0x5e2   :  { %620 = vrot.lane.b32.xlu0 %v612_v30, %s930_s1  ;;  %v614_v35 = vadd.f32 %v609_v31, %v582_v33  ;;  %v572_v47 = vadd.f32 1.0, %v832_v45  ;;  %v834_v48 = vpop.eup %833 }
 0x5e3   :  { %v836_v49 = vpop.eup %835  ;;  %837 = vrcp.f32 %v573_v46  ;;  %v574_v50 = vadd.f32 1.0, %v834_v48 }
 0x5e4   :  { %839 = vrcp.f32 %v572_v47  ;;  %v575_v51 = vadd.f32 1.0, %v836_v49 }
 0x5e5   :  { %626 = vrot.lane.b32.xlu1 %v615_v34, %s930_s1  ;;  %841 = vrcp.f32 %v574_v50 }
 0x5e6   :  { %624 = vrot.lane.b32.xlu0 %v614_v35, %s930_s1  ;;  %843 = vrcp.f32 %v575_v51 }
 0x5ed   :  { %v838_v52 = vpop.eup %837 }
 0x5ee   :  { %v840_v54 = vpop.eup %839 }
 0x5ef   :  { %v842_v60 = vpop.eup %841 }
 0x5f0   :  { %v844_v62 = vpop.eup %843 }
 0x653   :  { %v623_v53 = vpop.permute.xlu1 %622 }
 0x654   :  { %v633_v55 = vmul.f32 %v838_v52, %v623_v53  ;;  %v621_v56 = vpop.permute.xlu0 %620 }
 0x655   :  { %v632_v58 = vmul.f32 %v840_v54, %v621_v56 }
 0x657   :  { %v636_v59 = vadd.f32 %v633_v55, %v632_v58  ;;  %v627_v3 = vpop.permute.xlu1 %626 }
 0x658   :  { %v625_v61 = vpop.permute.xlu0 %624  ;;  %v635_v63 = vmul.f32 %v844_v62, %v627_v3 }
 0x659   :  { %v634_v0 = vmul.f32 %v842_v60, %v625_v61 }
 0x65b   :  { %v637_v1 = vadd.f32 %v636_v59, %v634_v0 }
 0x65d   :  { %v638_v2 = vadd.f32 %v637_v1, %v635_v63 }
 0x65f   :  { %v639_v4 = vsel %vm70_vm1, %v638_v2, 0.0  ;;  %v647_v5 = vmul.f32 %v638_v2, %v638_v2 }
 0x660   :  { %v640_v6 = vrot.slane %v639_v4, 4 }
 0x661   :  { %v648_v7 = vsel %vm70_vm1, %v647_v5, 0.0 }
 0x662   :  { %v641_v8 = vadd.f32 %v640_v6, %v639_v4  ;;  %v649_v9 = vrot.slane %v648_v7, 4 }
 0x664   :  { %v642_v10 = vrot.slane %v641_v8, 2  ;;  %v650_v11 = vadd.f32 %v649_v9, %v648_v7 }
 0x666   :  { %v643_v12 = vadd.f32 %v642_v10, %v641_v8  ;;  %v651_v13 = vrot.slane %v650_v11, 2 }
 0x668   :  { %v644_v14 = vrot.slane %v643_v12, 1  ;;  %v652_v15 = vadd.f32 %v651_v13, %v650_v11 }
 0x66a   :  { %v645_v16 = vadd.f32 %v644_v14, %v643_v12  ;;  %v653_v17 = vrot.slane %v652_v15, 1 }
 0x66c   :  { %v646_v18 = vmul.f32 0.125, %v645_v16  ;;  %v654_v20 = vadd.f32 %v653_v17, %v652_v15 }
 0x66e   :  { %v655_v21 = vmul.f32 0.125, %v654_v20  ;;  %v656_v19 = vmul.f32 %v646_v18, %v646_v18  ;;  %v658_v24 = vsub.f32 %v638_v2, %v646_v18 }
 0x670   :  { %v657_v22 = vsub.f32 %v655_v21, %v656_v19 }
 0x672   :  { %v659_v23 = vadd.f32 1e-05, %v657_v22 }
 0x674   :  { %845 = vrsqrt.f32 %v659_v23 }
 0x67e   :  { %v846_v25 = vpop.eup %845 }
 0x67f   :  { %v661_v26 = vmul.f32 %v846_v25, %v658_v24 }
 0x681   :  { %v662_v27 = vadd.f32 %v661_v26, %v1076_v57 }
 0x683   :  { %v664_v28 = vand.u32 2147483647, %v662_v27  ;;  %v663_v34 = vmax.f32 %v662_v27, 0.0 }
 0x685   :  { %v665_v29 = vsub.f32 0.0, %v664_v28 }
 0x687   :  { %v666_v30 = vmul.f32 1.442695, %v665_v29 }
 0x689   :  { %847 = vpow2.f32 %v666_v30 }
 0x693   :  { %v848_v31 = vpop.eup %847 }
 0x694   :  { %v668_v32 = vadd.f32 1.0, %v848_v31 }
 0x696   :  { %849 = vlog2.f32 %v668_v32 }
 0x6a0   :  { %v850_v33 = vpop.eup %849 }
 0x6a1   :  { %v670_v35 = vmul.f32 0.6931472, %v850_v33 }
 0x6a3   :  { %v671_v36 = vadd.f32 %v670_v35, %v663_v34 }
 0x6a5   :  { %672 = vst.msk [vmem:[#allocation7] sm:$0xff] %vm70_vm1, %v671_v36 }
 0x6a6   :  { %906 = shalt.err (!%p903_p6)
}
 0x6a7   :  { %s907_s12 = scalar_lea.hbm %s1123_s5, 128 }
 0x6a8   :  { %p908_p7 = scmp.ne.s32.totalorder %s1123_s5, %s907_s12  ;;  %p911_p8 = scmp.lt.u32.totalorder %s907_s12, %s1123_s5 }
 0x6aa   :  { %p913_p9 = pnand %p911_p8, %p908_p7 }
 0x6ac   :  { %916 = shalt.err (!%p913_p9)
}
 0x6ad   :  { %682 = dma.vmem_to_hbm [thread:$0]  %s680_s8, 128, %s1123_s5, [#allocation4]  }
 0x6ae   :  { %921 = dma.done.wait [#allocation4], 128  }
 0x6af   :  { %922 = vsyncadd [#allocation4], 4294967168 }
 0x6b0   :  { %686 = vsyncpa [#allocation3], 1 }
 0x6b1   :  { %687 = vsyncpa [#allocation6], 1 }
 0x6b2   :  { %688 = vsyncpa [#allocation4], 1 }

</bundles_post_ra>
